<compile_context>
chip_gen: v7x
topology: tpu7x:2x2x1
jax: 0.10.0
libtpu: 0.0.40
codegen_flags: <defaults>
</compile_context>

<pallas_src>
import functools
import math

import jax
import jax.numpy as jnp
from jax.experimental import pallas as pl
from jax.experimental.pallas import tpu as pltpu


def _round_up(x, m):
    return (x + m - 1) // m * m


def lora_linear_kernel(x_ref, w_ref, b_ref, wa_ref, wb_ref, o_ref,
                       acc_ref, xa_ref):
    """Fused base-linear + LoRA, tiled over (M, N, K) with f32 accumulators.

    Per grid step (i, j, k):
      acc  += x_tile @ W_tile          (bm x bk) @ (bk x bn)
      xa   += x_tile @ W_a_tile        (bm x bk) @ (bk x rank_p)
    At k == last:
      o = acc + bias + xa @ (scale-folded W_b)   (rank_p x bn up-projection)
    """
    k = pl.program_id(2)

    @pl.when(k == 0)
    def _():
        acc_ref[...] = jnp.zeros_like(acc_ref)
        xa_ref[...] = jnp.zeros_like(xa_ref)

    x = x_ref[...]
    acc_ref[...] += jnp.dot(x, w_ref[...], preferred_element_type=jnp.float32)
    xa_ref[...] += jnp.dot(x, wa_ref[...], preferred_element_type=jnp.float32)

    @pl.when(k == pl.num_programs(2) - 1)
    def _():
        # Keep the LoRA intermediate in f32 (cast W_b up, never the accumulator
        # down) — scale is already folded into W_b on the host.
        lora = jnp.dot(xa_ref[...], wb_ref[...].astype(jnp.float32),
                       preferred_element_type=jnp.float32)
        out = acc_ref[...] + b_ref[...].astype(jnp.float32) + lora
        o_ref[...] = out.astype(o_ref.dtype)


def linear_with_lora(x, w, b, w_a, w_b, *, alpha, rank,
                     bm=128, bn=512, bk=512):
    """x: [B, in_dim], w: [in_dim, out_dim], b: [out_dim],
    w_a: [in_dim, rank], w_b: [rank, out_dim]."""
    B, in_dim = x.shape
    out_dim = w.shape[1]
    scale = alpha / rank

    # Fold scale into W_b on the host (kills a full-tile VPU multiply).
    w_b_scaled = (w_b * jnp.asarray(scale, w_b.dtype)).astype(w_b.dtype)

    # Lane-dense padded rank for the xa intermediate / W_b block.
    rank_p = 128

    # Tile sizes (clipped to the padded problem size; multiples of (8, 128)).
    bm = min(bm, _round_up(B, 8))
    bn = min(bn, _round_up(out_dim, 128))
    bk = min(bk, _round_up(in_dim, 128))

    B_p = _round_up(B, bm)
    out_p = _round_up(out_dim, bn)
    in_p = _round_up(in_dim, bk)

    # Zero-pad everything (exact: padded rows/cols are zero on both operands).
    xp = jnp.zeros((B_p, in_p), x.dtype).at[:B, :in_dim].set(x)
    wp = jnp.zeros((in_p, out_p), w.dtype).at[:in_dim, :out_dim].set(w)
    bp = jnp.zeros((1, out_p), b.dtype).at[0, :out_dim].set(b)
    wap = jnp.zeros((in_p, rank_p), w_a.dtype).at[:in_dim, :rank].set(w_a)
    wbp = (jnp.zeros((rank_p, out_p), w_b.dtype)
           .at[:rank, :out_dim].set(w_b_scaled))

    grid = (B_p // bm, out_p // bn, in_p // bk)

    flops = 2 * B * in_dim * out_dim + 2 * B * in_dim * rank + 2 * B * rank * out_dim
    bytes_accessed = (x.size * x.dtype.itemsize
                      + w.size * w.dtype.itemsize
                      + b.size * b.dtype.itemsize
                      + w_a.size * w_a.dtype.itemsize
                      + w_b.size * w_b.dtype.itemsize
                      + B * out_dim * x.dtype.itemsize)

    out_p_arr = pl.pallas_call(
        lora_linear_kernel,
        out_shape=jax.ShapeDtypeStruct((B_p, out_p), x.dtype),
        grid_spec=pltpu.PrefetchScalarGridSpec(
            num_scalar_prefetch=0,
            grid=grid,
            in_specs=[
                pl.BlockSpec((bm, bk), lambda i, j, k: (i, k)),        # x tile
                pl.BlockSpec((bk, bn), lambda i, j, k: (k, j)),        # W tile
                pl.BlockSpec((1, bn), lambda i, j, k: (0, j)),         # bias
                pl.BlockSpec((bk, rank_p), lambda i, j, k: (k, 0)),    # W_a tile
                pl.BlockSpec((rank_p, bn), lambda i, j, k: (0, j)),    # W_b tile
            ],
            out_specs=pl.BlockSpec((bm, bn), lambda i, j, k: (i, j)),
            scratch_shapes=[
                pltpu.VMEM((bm, bn), jnp.float32),      # base accumulator
                pltpu.VMEM((bm, rank_p), jnp.float32),  # xa = x @ W_a accumulator
            ],
        ),
        compiler_params=pltpu.CompilerParams(
            dimension_semantics=("parallel", "parallel", "arbitrary"),
            vmem_limit_bytes=32 * 1024 * 1024,
        ),
        cost_estimate=pl.CostEstimate(
            flops=flops, transcendentals=0, bytes_accessed=bytes_accessed),
    )(xp, wp, bp, wap, wbp)

    return out_p_arr[:B, :out_dim]


if __name__ == "__main__":
    # Small shapes consistent with nn.Linear(in_features=32, out_features=64),
    # rank=4, alpha=8.
    B, in_dim, out_dim, rank, alpha = 8, 32, 64, 4, 8

    key = jax.random.PRNGKey(0)
    k_x, k_w, k_b, k_wa, k_wb = jax.random.split(key, 5)

    x = jax.random.normal(k_x, (B, in_dim), dtype=jnp.float32)

    # Deterministic synthetic parameter init (shapes match the module).
    lim = 1.0 / math.sqrt(in_dim)
    w = jax.random.uniform(k_w, (in_dim, out_dim), jnp.float32, -lim, lim)
    b = jax.random.uniform(k_b, (out_dim,), jnp.float32, -lim, lim)
    # LoRA: W_a ~ kaiming_uniform(a=sqrt(5)) bound; W_b nonzero here so the
    # LoRA path is actually exercised (module inits it to zero).
    wa_bound = math.sqrt(6.0 / ((1.0 + 5.0) * rank))
    w_a = jax.random.uniform(k_wa, (in_dim, rank), jnp.float32,
                             -wa_bound, wa_bound)
    w_b = 0.01 * jax.random.normal(k_wb, (rank, out_dim), dtype=jnp.float32)

    out = linear_with_lora(x, w, b, w_a, w_b, alpha=alpha, rank=rank)
    out = jax.block_until_ready(out)

    # Pure-JAX reference for correctness.
    scale = alpha / rank
    ref = x @ w + b + scale * ((x @ w_a) @ w_b)
    assert out.shape == (B, out_dim)
    assert jnp.allclose(out, ref, atol=1e-5, rtol=1e-5), "mismatch vs reference"

    print("KERNEL_OK")
</pallas_src>

<mosaic_0001>
module attributes {stable_mosaic.version = 11 : i64} {
  func.func @lora_linear_kernel(%arg0: i32, %arg1: i32, %arg2: i32, %arg3: memref<8x128xf32, #tpu.memory_space<vmem>>, %arg4: memref<128x128xf32, #tpu.memory_space<vmem>>, %arg5: memref<1x128xf32, #tpu.memory_space<vmem>>, %arg6: memref<128x128xf32, #tpu.memory_space<vmem>>, %arg7: memref<128x128xf32, #tpu.memory_space<vmem>>, %arg8: memref<8x128xf32, #tpu.memory_space<vmem>>, %arg9: memref<8x128xf32, #tpu.memory_space<vmem>>, %arg10: memref<8x128xf32, #tpu.memory_space<vmem>>) attributes {dimension_semantics = [#tpu.dimension_semantics<parallel>, #tpu.dimension_semantics<parallel>, #tpu.dimension_semantics<arbitrary>], iteration_bounds = array<i64: 1, 1, 1>, scalar_prefetch = 0 : i64, scratch_operands = 2 : i64, tpu.core_type = #tpu.core_type<tc>, window_params = [{transform_indices = @transform_0, window_bounds = array<i64: 8, 128>}, {transform_indices = @transform_1, window_bounds = array<i64: 128, 128>}, {transform_indices = @transform_2, window_bounds = array<i64: 1, 128>}, {transform_indices = @transform_3, window_bounds = array<i64: 128, 128>}, {transform_indices = @transform_4, window_bounds = array<i64: 128, 128>}, {transform_indices = @transform_5, window_bounds = array<i64: 8, 128>}]} {
    %c0_i32 = arith.constant 0 : i32
    %0 = arith.cmpi eq, %arg2, %c0_i32 : i32
    %1 = arith.extui %0 : i1 to i32
    %c0_i32_0 = arith.constant 0 : i32
    %2 = arith.cmpi ne, %1, %c0_i32_0 : i32
    scf.if %2 {
      %cst_17 = arith.constant 0.000000e+00 : f32
      %17 = vector.broadcast %cst_17 : f32 to vector<8x128xf32>
      %c0_18 = arith.constant 0 : index
      %c0_19 = arith.constant 0 : index
      %18 = vector.load %arg9[%c0_18, %c0_19] : memref<8x128xf32, #tpu.memory_space<vmem>>, vector<8x128xf32>
      tpu.vector_store %arg9[%c0_18, %c0_19], %17 {strides = array<i32>} : memref<8x128xf32, #tpu.memory_space<vmem>>, vector<8x128xf32>,
      %cst_20 = arith.constant 0.000000e+00 : f32
      %19 = vector.broadcast %cst_20 : f32 to vector<8x128xf32>
      %c0_21 = arith.constant 0 : index
      %c0_22 = arith.constant 0 : index
      %20 = vector.load %arg10[%c0_21, %c0_22] : memref<8x128xf32, #tpu.memory_space<vmem>>, vector<8x128xf32>
      tpu.vector_store %arg10[%c0_21, %c0_22], %19 {strides = array<i32>} : memref<8x128xf32, #tpu.memory_space<vmem>>, vector<8x128xf32>,
    } else {
    }
    %c0 = arith.constant 0 : index
    %c0_1 = arith.constant 0 : index
    %3 = vector.load %arg3[%c0, %c0_1] : memref<8x128xf32, #tpu.memory_space<vmem>>, vector<8x128xf32>
    %c0_2 = arith.constant 0 : index
    %c0_3 = arith.constant 0 : index
    %4 = vector.load %arg9[%c0_2, %c0_3] : memref<8x128xf32, #tpu.memory_space<vmem>>, vector<8x128xf32>
    %c0_4 = arith.constant 0 : index
    %c0_5 = arith.constant 0 : index
    %5 = vector.load %arg4[%c0_4, %c0_5] : memref<128x128xf32, #tpu.memory_space<vmem>>, vector<128x128xf32>
    %cst = arith.constant dense<0.000000e+00> : vector<8x128xf32>
    %6 = tpu.matmul %3, %5, %cst {dimension_numbers = #tpu.dot_dimension_numbers<[1], [0], [0], [1], [0, 0, 1, 1], [], []>} : vector<8x128xf32>, vector<128x128xf32>, vector<8x128xf32> -> vector<8x128xf32>
    %7 = arith.addf %4, %6 : vector<8x128xf32>
    %c0_6 = arith.constant 0 : index
    %c0_7 = arith.constant 0 : index
    %8 = vector.load %arg9[%c0_6, %c0_7] : memref<8x128xf32, #tpu.memory_space<vmem>>, vector<8x128xf32>
    tpu.vector_store %arg9[%c0_6, %c0_7], %7 {strides = array<i32>} : memref<8x128xf32, #tpu.memory_space<vmem>>, vector<8x128xf32>,
    %c0_8 = arith.constant 0 : index
    %c0_9 = arith.constant 0 : index
    %9 = vector.load %arg10[%c0_8, %c0_9] : memref<8x128xf32, #tpu.memory_space<vmem>>, vector<8x128xf32>
    %c0_10 = arith.constant 0 : index
    %c0_11 = arith.constant 0 : index
    %10 = vector.load %arg6[%c0_10, %c0_11] : memref<128x128xf32, #tpu.memory_space<vmem>>, vector<128x128xf32>
    %cst_12 = arith.constant dense<0.000000e+00> : vector<8x128xf32>
    %11 = tpu.matmul %3, %10, %cst_12 {dimension_numbers = #tpu.dot_dimension_numbers<[1], [0], [0], [1], [0, 0, 1, 1], [], []>} : vector<8x128xf32>, vector<128x128xf32>, vector<8x128xf32> -> vector<8x128xf32>
    %12 = arith.addf %9, %11 : vector<8x128xf32>
    %c0_13 = arith.constant 0 : index
    %c0_14 = arith.constant 0 : index
    %13 = vector.load %arg10[%c0_13, %c0_14] : memref<8x128xf32, #tpu.memory_space<vmem>>, vector<8x128xf32>
    tpu.vector_store %arg10[%c0_13, %c0_14], %12 {strides = array<i32>} : memref<8x128xf32, #tpu.memory_space<vmem>>, vector<8x128xf32>,
    %c0_i32_15 = arith.constant 0 : i32
    %14 = arith.cmpi eq, %arg2, %c0_i32_15 : i32
    %15 = arith.extui %14 : i1 to i32
    %c0_i32_16 = arith.constant 0 : i32
    %16 = arith.cmpi ne, %15, %c0_i32_16 : i32
    scf.if %16 {
      %c0_17 = arith.constant 0 : index
      %c0_18 = arith.constant 0 : index
      %17 = vector.load %arg10[%c0_17, %c0_18] : memref<8x128xf32, #tpu.memory_space<vmem>>, vector<8x128xf32>
      %c0_19 = arith.constant 0 : index
      %c0_20 = arith.constant 0 : index
      %18 = vector.load %arg7[%c0_19, %c0_20] : memref<128x128xf32, #tpu.memory_space<vmem>>, vector<128x128xf32>
      %cst_21 = arith.constant dense<0.000000e+00> : vector<8x128xf32>
      %19 = tpu.matmul %17, %18, %cst_21 {dimension_numbers = #tpu.dot_dimension_numbers<[1], [0], [0], [1], [0, 0, 1, 1], [], []>} : vector<8x128xf32>, vector<128x128xf32>, vector<8x128xf32> -> vector<8x128xf32>
      %c0_22 = arith.constant 0 : index
      %c0_23 = arith.constant 0 : index
      %20 = vector.load %arg9[%c0_22, %c0_23] : memref<8x128xf32, #tpu.memory_space<vmem>>, vector<8x128xf32>
      %c0_24 = arith.constant 0 : index
      %c0_25 = arith.constant 0 : index
      %21 = vector.load %arg5[%c0_24, %c0_25] : memref<1x128xf32, #tpu.memory_space<vmem>>, vector<1x128xf32>
      %22 = vector.broadcast %21 : vector<1x128xf32> to vector<8x128xf32>
      %23 = arith.addf %20, %22 : vector<8x128xf32>
      %24 = arith.addf %23, %19 : vector<8x128xf32>
      %c0_26 = arith.constant 0 : index
      %c0_27 = arith.constant 0 : index
      %25 = vector.load %arg8[%c0_26, %c0_27] : memref<8x128xf32, #tpu.memory_space<vmem>>, vector<8x128xf32>
      tpu.vector_store %arg8[%c0_26, %c0_27], %24 {strides = array<i32>} : memref<8x128xf32, #tpu.memory_space<vmem>>, vector<8x128xf32>,
    } else {
    }
    return
  }
  func.func @transform_0(%arg0: i32, %arg1: i32, %arg2: i32) -> (i32, i32) {
    %c0_i32 = arith.constant 0 : i32
    return %arg0, %arg2 : i32, i32
  }
  func.func @transform_1(%arg0: i32, %arg1: i32, %arg2: i32) -> (i32, i32) {
    %c0_i32 = arith.constant 0 : i32
    return %arg2, %arg1 : i32, i32
  }
  func.func @transform_2(%arg0: i32, %arg1: i32, %arg2: i32) -> (i32, i32) {
    %c0_i32 = arith.constant 0 : i32
    %c0_i32_0 = arith.constant 0 : i32
    return %c0_i32, %arg1 : i32, i32
  }
  func.func @transform_3(%arg0: i32, %arg1: i32, %arg2: i32) -> (i32, i32) {
    %c0_i32 = arith.constant 0 : i32
    %c0_i32_0 = arith.constant 0 : i32
    return %arg2, %c0_i32 : i32, i32
  }
  func.func @transform_4(%arg0: i32, %arg1: i32, %arg2: i32) -> (i32, i32) {
    %c0_i32 = arith.constant 0 : i32
    %c0_i32_0 = arith.constant 0 : i32
    return %c0_i32, %arg1 : i32, i32
  }
  func.func @transform_5(%arg0: i32, %arg1: i32, %arg2: i32) -> (i32, i32) {
    %c0_i32 = arith.constant 0 : i32
    return %arg0, %arg1 : i32, i32
  }
}

</mosaic_0001>

<bundles_post_ra>
// kernel: tpu_custom_call.1
= control target key start
LH: loop header
LB: loop body
LE: loop exit
PB: predicated region body
PF: predicated region fallthrough
CT: control target
= control target key end

     0   :  { %10 = vsyncpa [#allocation5], 0  ;;  %s879_s0 = inlined_call_operand.hbm [shape: f32[8,128], index: 0, kind: input, shape index: {}]   ;;  %s880_s1 = inlined_call_operand.hbm [shape: f32[128,128], index: 1, kind: input, shape index: {}]   ;;  %s881_s2 = inlined_call_operand.vmem [shape: f32[1,128], index: 2, kind: input, shape index: {}]   ;;  %s882_s3 = inlined_call_operand.hbm [shape: f32[128,128], index: 3, kind: input, shape index: {}]   ;;  %s883_s4 = inlined_call_operand.hbm [shape: f32[128,128], index: 4, kind: input, shape index: {}]   ;;  %s884_s5 = inlined_call_operand.hbm [shape: f32[8,128], index: 5, kind: output, shape index: {}]  }
   0x1   :  { %11 = vsyncpa [#allocation8], 0 }
   0x2   :  { %12 = vsyncpa [#allocation11], 0 }
   0x3   :  { %13 = vsyncpa [#allocation6], 0  ;;  %s737_s18 = smov [#allocation7]   ;;  %s619_s22 = scalar_lea.hbm %s880_s1, 2048 }
   0x4   :  { %s29_s19 = sshll.u32 %s737_s18, 4  ;;  %p620_p0 = scmp.ne.s32.totalorder %s880_s1, %s619_s22  ;;  %s30_s19 = int_to_ptr.vmem [resolvable:$true] %s29_s19 }
   0x5   :  { %p623_p1 = scmp.lt.u32.totalorder %s619_s22, %s880_s1 }
   0x7   :  { %p625_p2 = pnand %p623_p1, %p620_p0 }
   0x9   :  { %628 = shalt.err (!%p625_p2)
}
   0xa   :  { %s629_s27 = scalar_lea.vmem %s30_s19, 2048  ;;  %p634_p4 = scmp.lt.s32.totalorder %s30_s19, %s30_s19 }
   0xb   :  { %p630_p3 = scmp.ne.s32.totalorder %s30_s19, %s629_s27  ;;  %p635_p5 = scmp.lt.s32.totalorder %s629_s27, %s629_s27 }
   0xd   :  { %p636_p6 = por %p635_p5, %p634_p4 }
   0xf   :  { %p637_p7 = pnand %p636_p6, %p630_p3 }
  0x11   :  { %640 = shalt.err (!%p637_p7)
}
  0x12   :  { %s738_s28 = smov 128   ;;  %s739_s29 = smov 8  }
  0x13   :  { %35 = dma.hbm_to_vmem [thread:$0]  %s880_s1, 2048, %s30_s19, [#allocation8], %s738_s28, %s738_s28, %s739_s29  }
  0x14   :  { %s740_s7 = smov [#allocation4]   ;;  %s741_s9 = smov [#allocation9]  }
  0x15   :  { %s20_s8 = sshll.u32 %s740_s7, 4  ;;  %s43_s10 = sshll.u32 %s741_s9, 4  ;;  %s21_s8 = int_to_ptr.vmem [resolvable:$true] %s20_s8  ;;  %s44_s10 = int_to_ptr.vmem [resolvable:$true] %s43_s10 }
  0x16   :  { %s641_s13 = scalar_lea.hbm %s879_s0, 128 }
  0x17   :  { %p642_p8 = scmp.ne.s32.totalorder %s879_s0, %s641_s13  ;;  %p645_p9 = scmp.lt.u32.totalorder %s641_s13, %s879_s0 }
  0x19   :  { %p647_p10 = pnand %p645_p9, %p642_p8 }
  0x1b   :  { %650 = shalt.err (!%p647_p10)
}
  0x1c   :  { %s651_s1 = scalar_lea.vmem %s21_s8, 128  ;;  %p656_p12 = scmp.lt.s32.totalorder %s21_s8, %s21_s8 }
  0x1d   :  { %p652_p11 = scmp.ne.s32.totalorder %s21_s8, %s651_s1  ;;  %p657_p13 = scmp.lt.s32.totalorder %s651_s1, %s651_s1 }
  0x1f   :  { %p658_p0 = por %p657_p13, %p656_p12 }
  0x21   :  { %p659_p1 = pnand %p658_p0, %p652_p11 }
  0x23   :  { %662 = shalt.err (!%p659_p1)
}
  0x24   :  { %23 = dma.hbm_to_vmem [thread:$0]  %s879_s0, 128, %s21_s8, [#allocation5]  }
  0x25   :  { %s663_s22 = scalar_lea.hbm %s882_s3, 2048 }
  0x26   :  { %p664_p2 = scmp.ne.s32.totalorder %s882_s3, %s663_s22  ;;  %p667_p3 = scmp.lt.u32.totalorder %s663_s22, %s882_s3 }
  0x28   :  { %p669_p4 = pnand %p667_p3, %p664_p2 }
  0x2a   :  { %672 = shalt.err (!%p669_p4)
}
  0x2b   :  { %s673_s27 = scalar_lea.vmem %s44_s10, 2048  ;;  %p678_p6 = scmp.lt.s32.totalorder %s44_s10, %s44_s10 }
  0x2c   :  { %p674_p5 = scmp.ne.s32.totalorder %s44_s10, %s673_s27  ;;  %p679_p7 = scmp.lt.s32.totalorder %s673_s27, %s673_s27 }
  0x2e   :  { %p680_p8 = por %p679_p7, %p678_p6 }
  0x30   :  { %p681_p9 = pnand %p680_p8, %p674_p5 }
  0x32   :  { %684 = shalt.err (!%p681_p9)
}
  0x33   :  { %49 = dma.hbm_to_vmem [thread:$0]  %s882_s3, 2048, %s44_s10, [#allocation8], %s738_s28, %s738_s28, %s739_s29  }
  0x34   :  { %s742_s6 = smov [#allocation10]   ;;  %s685_s11 = scalar_lea.hbm %s883_s4, 2048 }
  0x35   :  { %s55_s7 = sshll.u32 %s742_s6, 4  ;;  %p686_p10 = scmp.ne.s32.totalorder %s883_s4, %s685_s11  ;;  %s56_s7 = int_to_ptr.vmem [resolvable:$true] %s55_s7 }
  0x36   :  { %p689_p11 = scmp.lt.u32.totalorder %s685_s11, %s883_s4 }
  0x38   :  { %p691_p12 = pnand %p689_p11, %p686_p10 }
  0x3a   :  { %694 = shalt.err (!%p691_p12)
}
  0x3b   :  { %s695_s16 = scalar_lea.vmem %s56_s7, 2048  ;;  %p700_p0 = scmp.lt.s32.totalorder %s56_s7, %s56_s7 }
  0x3c   :  { %p696_p13 = scmp.ne.s32.totalorder %s56_s7, %s695_s16  ;;  %p701_p1 = scmp.lt.s32.totalorder %s695_s16, %s695_s16 }
  0x3e   :  { %p702_p2 = por %p701_p1, %p700_p0 }
  0x40   :  { %p703_p3 = pnand %p702_p2, %p696_p13 }
  0x42   :  { %706 = shalt.err (!%p703_p3)
}
  0x43   :  { %61 = dma.hbm_to_vmem [thread:$0]  %s883_s4, 2048, %s56_s7, [#allocation11], %s738_s28, %s738_s28, %s739_s29  }
  0x44   :  { %729 = dma.done.wait [#allocation5], 128  }
  0x45   :  { %730 = vsyncadd [#allocation5], 4294967168 }
  0x46   :  { %731 = dma.done.wait [#allocation8], 4096  }
  0x47   :  { %732 = vsyncadd [#allocation8], 4294963200 }
  0x48   :  { %733 = dma.done.wait [#allocation11], 2048  }
  0x49   :  { %734 = vsyncadd [#allocation11], 4294965248  ;;  %v743_v0 = vmov 0.0|0.0   ;;  %vm744_vm0 = vmmov 0   ;;  %v745_v1 = vmov 0.0   ;;  %v171_v2 = vld [vmem:[#allocation9] sm:$0xff] }
  0x4a   :  { %558 = vmatprep.subr.bf16.mxu1 %v743_v0  ;;  %496 = vmatprep.mubr.msk.f32.mxu1 %vm744_vm0, %v745_v1  ;;  %v172_v3 = vld [vmem:[#allocation9 + $0x8] sm:$0xff]  ;;  %v173_v4 = vld [vmem:[#allocation9 + $0x10] sm:$0xff]  ;;  %v174_v6 = vld [vmem:[#allocation9 + $0x18] sm:$0xff]  ;;  %s746_s29 = smov [#allocation12]  }
  0x4b   :  { %534 = vmatprep.subr.bf16.mxu0 %v743_v0  ;;  %461 = vmatprep.mubr.msk.f32.mxu0 %vm744_vm0, %v745_v1  ;;  %v559_v5 = vpack.c.bf16 %v172_v3, %v171_v2  ;;  %v562_v7 = vpack.c.bf16 %v174_v6, %v173_v4  ;;  %v175_v8 = vld [vmem:[#allocation9 + $0x20] sm:$0xff]  ;;  %v176_v9 = vld [vmem:[#allocation9 + $0x28] sm:$0xff]  ;;  %v84_v12 = vld [vmem:[#allocation7 + $0x10] sm:$0xff]  ;;  %s366_s17 = sshll.u32 %s746_s29, 4  ;;  %s367_s17 = int_to_ptr.vmem [resolvable:$true] %s366_s17 }
  0x4c   :  { %v82_v10 = vld [vmem:[#allocation7] sm:$0xff]  ;;  %v83_v11 = vld [vmem:[#allocation7 + $0x8] sm:$0xff]  ;;  %v85_v13 = vld [vmem:[#allocation7 + $0x18] sm:$0xff]  ;;  %v565_v14 = vpack.c.bf16 %v176_v9, %v175_v8  ;;  %s707_s1 = scalar_lea.vmem %s367_s17, 128  ;;  %p712_p5 = scmp.lt.s32.totalorder %s367_s17, %s367_s17 }
  0x4d   :  { %560 = vmatpush3.bf16.msra.mxu1 %v559_v5  ;;  %v535_v15 = vpack.c.bf16 %v83_v11, %v82_v10  ;;  %v177_v16 = vld [vmem:[#allocation9 + $0x30] sm:$0xff]  ;;  %v178_v17 = vld [vmem:[#allocation9 + $0x38] sm:$0xff]  ;;  %v538_v18 = vpack.c.bf16 %v85_v13, %v84_v12  ;;  %v86_v19 = vld [vmem:[#allocation7 + $0x20] sm:$0xff]  ;;  %p708_p4 = scmp.ne.s32.totalorder %s367_s17, %s707_s1  ;;  %p713_p6 = scmp.lt.s32.totalorder %s707_s1, %s707_s1 }
  0x4e   :  { %561 = vmatprep.subr.bf16.mxu1 %v743_v0  ;;  %v87_v20 = vld [vmem:[#allocation7 + $0x28] sm:$0xff]  ;;  %v568_v21 = vpack.c.bf16 %v178_v17, %v177_v16  ;;  %v179_v22 = vld [vmem:[#allocation9 + $0x40] sm:$0xff]  ;;  %v88_v25 = vld [vmem:[#allocation7 + $0x30] sm:$0xff] }
  0x4f   :  { %536 = vmatpush3.bf16.msra.mxu0 %v535_v15  ;;  %v180_v23 = vld [vmem:[#allocation9 + $0x48] sm:$0xff]  ;;  %v541_v24 = vpack.c.bf16 %v87_v20, %v86_v19  ;;  %v89_v26 = vld [vmem:[#allocation7 + $0x38] sm:$0xff]  ;;  %v181_v28 = vld [vmem:[#allocation9 + $0x50] sm:$0xff]  ;;  %p714_p7 = por %p713_p6, %p712_p5 }
  0x50   :  { %537 = vmatprep.subr.bf16.mxu0 %v743_v0  ;;  %v571_v27 = vpack.c.bf16 %v180_v23, %v179_v22  ;;  %v182_v29 = vld [vmem:[#allocation9 + $0x58] sm:$0xff]  ;;  %v544_v30 = vpack.c.bf16 %v89_v26, %v88_v25  ;;  %v90_v31 = vld [vmem:[#allocation7 + $0x40] sm:$0xff]  ;;  %v91_v32 = vld [vmem:[#allocation7 + $0x48] sm:$0xff] }
  0x51   :  { %563 = vmatpush3.bf16.msra.mxu1 %v562_v7  ;;  %v574_v33 = vpack.c.bf16 %v182_v29, %v181_v28  ;;  %v183_v34 = vld [vmem:[#allocation9 + $0x60] sm:$0xff]  ;;  %v184_v35 = vld [vmem:[#allocation9 + $0x68] sm:$0xff]  ;;  %v547_v36 = vpack.c.bf16 %v91_v32, %v90_v31  ;;  %v92_v37 = vld [vmem:[#allocation7 + $0x50] sm:$0xff]  ;;  %p715_p8 = pnand %p714_p7, %p708_p4 }
  0x52   :  { %564 = vmatprep.subr.bf16.mxu1 %v743_v0  ;;  %v93_v38 = vld [vmem:[#allocation7 + $0x58] sm:$0xff]  ;;  %v577_v39 = vpack.c.bf16 %v184_v35, %v183_v34  ;;  %v185_v40 = vld [vmem:[#allocation9 + $0x70] sm:$0xff]  ;;  %v94_v43 = vld [vmem:[#allocation7 + $0x60] sm:$0xff] }
  0x53   :  { %539 = vmatpush3.bf16.msra.mxu0 %v538_v18  ;;  %v186_v41 = vld [vmem:[#allocation9 + $0x78] sm:$0xff]  ;;  %v550_v42 = vpack.c.bf16 %v93_v38, %v92_v37  ;;  %v95_v44 = vld [vmem:[#allocation7 + $0x68] sm:$0xff]  ;;  %v96_v47 = vld [vmem:[#allocation7 + $0x70] sm:$0xff] }
  0x54   :  { %540 = vmatprep.subr.bf16.mxu0 %v743_v0  ;;  %v580_v45 = vpack.c.bf16 %v186_v41, %v185_v40  ;;  %v553_v46 = vpack.c.bf16 %v95_v44, %v94_v43  ;;  %v97_v48 = vld [vmem:[#allocation7 + $0x78] sm:$0xff]  ;;  %v263_v51 = vld [vmem:[#allocation10] sm:$0xff]  ;;  %v264_v52 = vld [vmem:[#allocation10 + $0x8] sm:$0xff] }
  0x55   :  { %566 = vmatpush3.bf16.msra.mxu1 %v565_v14  ;;  %v80_v49 = vld [vmem:[#allocation4] sm:$0xff]  ;;  %v556_v50 = vpack.c.bf16 %v97_v48, %v96_v47  ;;  %v583_v53 = vpack.c.bf16 %v264_v52, %v263_v51  ;;  %v265_v54 = vld [vmem:[#allocation10 + $0x10] sm:$0xff]  ;;  %v267_v57 = vld [vmem:[#allocation10 + $0x20] sm:$0xff] }
  0x56   :  { %567 = vmatprep.subr.bf16.mxu1 %v743_v0  ;;  %v266_v55 = vld [vmem:[#allocation10 + $0x18] sm:$0xff]  ;;  %v268_v58 = vld [vmem:[#allocation10 + $0x28] sm:$0xff]  ;;  %v269_v60 = vld [vmem:[#allocation10 + $0x30] sm:$0xff] }
  0x57   :  { %542 = vmatpush3.bf16.msra.mxu0 %v541_v24  ;;  %v586_v56 = vpack.c.bf16 %v266_v55, %v265_v54  ;;  %v589_v59 = vpack.c.bf16 %v268_v58, %v267_v57  ;;  %v270_v61 = vld [vmem:[#allocation10 + $0x38] sm:$0xff]  ;;  %v271_v63 = vld [vmem:[#allocation10 + $0x40] sm:$0xff]  ;;  %v272_v2 = vld [vmem:[#allocation10 + $0x48] sm:$0xff] }
  0x58   :  { %543 = vmatprep.subr.bf16.mxu0 %v743_v0  ;;  %v592_v62 = vpack.c.bf16 %v270_v61, %v269_v60  ;;  %v595_v3 = vpack.c.bf16 %v272_v2, %v271_v63  ;;  %v274_v4 = vld [vmem:[#allocation10 + $0x58] sm:$0xff]  ;;  %v275_v6 = vld [vmem:[#allocation10 + $0x60] sm:$0xff]  ;;  %v276_v7 = vld [vmem:[#allocation10 + $0x68] sm:$0xff] }
  0x59   :  { %569 = vmatpush3.bf16.msra.mxu1 %v568_v21  ;;  %v601_v8 = vpack.c.bf16 %v276_v7, %v275_v6  ;;  %v277_v9 = vld [vmem:[#allocation10 + $0x70] sm:$0xff]  ;;  %v278_v10 = vld [vmem:[#allocation10 + $0x78] sm:$0xff] }
  0x5a   :  { %570 = vmatprep.subr.bf16.mxu1 %v743_v0  ;;  %v604_v11 = vpack.c.bf16 %v278_v10, %v277_v9  ;;  %v377_v14 = vld [vmem:[%s881_s2] ss:$0 sm:$0xff] }
  0x5b   :  { %545 = vmatpush3.bf16.msra.mxu0 %v544_v30 }
  0x5c   :  { %546 = vmatprep.subr.bf16.mxu0 %v743_v0 }
  0x5d   :  { %572 = vmatpush3.bf16.msra.mxu1 %v571_v27 }
  0x5e   :  { %573 = vmatprep.subr.bf16.mxu1 %v743_v0 }
  0x5f   :  { %548 = vmatpush3.bf16.msra.mxu0 %v547_v36 }
  0x60   :  { %549 = vmatprep.subr.bf16.mxu0 %v743_v0 }
  0x61   :  { %575 = vmatpush3.bf16.msra.mxu1 %v574_v33 }
  0x62   :  { %576 = vmatprep.subr.bf16.mxu1 %v743_v0 }
  0x63   :  { %551 = vmatpush3.bf16.msra.mxu0 %v550_v42 }
  0x64   :  { %552 = vmatprep.subr.bf16.mxu0 %v743_v0 }
  0x65   :  { %578 = vmatpush3.bf16.msra.mxu1 %v577_v39 }
  0x66   :  { %579 = vmatprep.subr.bf16.mxu1 %v743_v0 }
  0x67   :  { %554 = vmatpush3.bf16.msra.mxu0 %v553_v46 }
  0x68   :  { %555 = vmatprep.subr.bf16.mxu0 %v743_v0 }
  0x69   :  { %581 = vmatpush3.bf16.msra.mxu1 %v580_v45 }
  0x6b   :  { %557 = vmatpush3.bf16.msra.mxu0 %v556_v50 }
  0x6c   :  { %497 = vmatmul.mubr.f32.vlgmr.msra.gmra.mrb[0].mxu1 %v80_v49  ;;  %582 = vmatprep.subr.bf16.mxu0 %v743_v0 }
  0x6e   :  { %462 = vmatmul.mubr.f32.vlgmr.msra.gmra.mrb[0].mxu0 %v80_v49 }
  0x6f   :  { %584 = vmatpush3.bf16.msra.mxu0 %v583_v53  ;;  %531 = vmatprep.mubr.msk.f32.mxu0 %vm744_vm0, %v745_v1  ;;  %v273_v1 = vld [vmem:[#allocation10 + $0x50] sm:$0xff] }
  0x70   :  { %585 = vmatprep.subr.bf16.mxu0 %v743_v0  ;;  %v598_v5 = vpack.c.bf16 %v274_v4, %v273_v1 }
  0x73   :  { %587 = vmatpush3.bf16.msra.mxu0 %v586_v56 }
  0x74   :  { %588 = vmatprep.subr.bf16.mxu0 %v743_v0 }
  0x77   :  { %590 = vmatpush3.bf16.msra.mxu0 %v589_v59 }
  0x78   :  { %591 = vmatprep.subr.bf16.mxu0 %v743_v0 }
  0x7b   :  { %593 = vmatpush3.bf16.msra.mxu0 %v592_v62 }
  0x7c   :  { %594 = vmatprep.subr.bf16.mxu0 %v743_v0 }
  0x7f   :  { %596 = vmatpush3.bf16.msra.mxu0 %v595_v3 }
  0x80   :  { %597 = vmatprep.subr.bf16.mxu0 %v743_v0 }
  0x83   :  { %599 = vmatpush3.bf16.msra.mxu0 %v598_v5 }
  0x84   :  { %600 = vmatprep.subr.bf16.mxu0 %v743_v0 }
  0x87   :  { %602 = vmatpush3.bf16.msra.mxu0 %v601_v8 }
  0x88   :  { %603 = vmatprep.subr.bf16.mxu0 %v743_v0 }
  0x8b   :  { %605 = vmatpush3.bf16.msra.mxu0 %v604_v11 }
 0x13f   :  { %v253_v12 = vpop.f32.mrb[0].mxu1 }
 0x140   :  { %v498_v13 = vpop.f32.mrb[1].mxu1  ;;  %532 = vmatmul.mubr.f32.vlgmr.msra.gmra.mrb[0].mxu0 %v253_v12 }
 0x213   :  { %v345_v15 = vpop.f32.mrb[0].mxu0 }
 0x214   :  { %v606_v16 = vadd.f32 %v377_v14, %v345_v15  ;;  %v533_v17 = vpop.f32.mrb[1].mxu0 }
 0x216   :  { %359 = vst [vmem:[#allocation12] sm:$0xff] %v606_v16 }
 0x217   :  { %718 = shalt.err (!%p715_p8)
}
 0x218   :  { %s719_s20 = scalar_lea.hbm %s884_s5, 128 }
 0x219   :  { %p720_p9 = scmp.ne.s32.totalorder %s884_s5, %s719_s20  ;;  %p723_p10 = scmp.lt.u32.totalorder %s719_s20, %s884_s5 }
 0x21b   :  { %p725_p11 = pnand %p723_p10, %p720_p9 }
 0x21d   :  { %728 = shalt.err (!%p725_p11)
}
 0x21e   :  { %369 = dma.vmem_to_hbm [thread:$0]  %s367_s17, 128, %s884_s5, [#allocation6]  }
 0x21f   :  { %735 = dma.done.wait [#allocation6], 128  }
 0x220   :  { %736 = vsyncadd [#allocation6], 4294967168 }
 0x221   :  { %373 = vsyncpa [#allocation5], 1 }
 0x222   :  { %374 = vsyncpa [#allocation8], 1 }
 0x223   :  { %375 = vsyncpa [#allocation11], 1 }
 0x224   :  { %376 = vsyncpa [#allocation6], 1 }

</bundles_post_ra>
